<compile_context>
chip_gen: v7x
topology: tpu7x:2x2x1
jax: 0.10.0
libtpu: 0.0.40
codegen_flags: <defaults>
</compile_context>

<pallas_src>
import functools
import numpy as np
import jax
import jax.numpy as jnp
from jax.experimental import pallas as pl
from jax.experimental.pallas import tpu as pltpu

# ----------------------------- small synthetic config -----------------------------
BATCH       = 2
EMBED       = 32          # embed_dim (768 in the real model)
HEADS       = 4
DEPTH       = 12
MLP_RATIO   = 4
PATCH       = 8           # patch_size (16 in the real model)
NUM_CLASSES = 309
PAD_CLASSES = 384         # 3*128, lane-aligned classifier output (sliced back to 309)
PRUNING_LOC = [3, 6, 9]
TOKEN_RATIO = [0.7, 0.7 ** 2, 0.7 ** 3]
REAL_BATCH  = 2           # real_batch (must equal the per-chunk batch)
AUDIO_H, AUDIO_W = 16, 24  # audio spectrogram (freq, time)
IMG_H, IMG_W     = 16, 16  # image spatial
LN_EPS   = 1e-5
ATTN_EPS = 1e-6
VMEM_LIMIT = 32 * 1024 * 1024
# TODO(synk): at real dims (C=768) re-budget VMEM (bf16 weights + possibly tile the
# 3072-wide fc1/fc2 hidden dim) — 32 MiB scoped limit is ample only at toy sizes.

# TODO(synk): @autocast() fp16 mixed precision is approximated with bf16 matmul
# operands + f32 accumulation; norms/softmax stay f32.


# --------------------------------- kernel helpers ----------------------------------
def _ln(x, g, b):
    mu = jnp.mean(x, axis=-1, keepdims=True)
    var = jnp.mean(jnp.square(x - mu), axis=-1, keepdims=True)
    return (x - mu) * jax.lax.rsqrt(var + LN_EPS) * g + b


def _const_idx(i, *, n):
    return (0,) * n


def _full_spec(a):
    return pl.BlockSpec(a.shape, functools.partial(_const_idx, n=a.ndim))


# -------------------------- fused 3-layer dual-stream stage ------------------------
def _stage_kernel(x_ref, pol_ref,
                  n1g_ref, n1b_ref, qkvw_ref, qkvb_ref, projw_ref, projb_ref,
                  n2g_ref, n2b_ref, fc1w_ref, fc1b_ref, fc2w_ref, fc2b_ref,
                  o_ref, *, heads, scale):
    l = pl.program_id(2)

    # Token activations stay resident in VMEM across the layer axis.
    @pl.when(l == 0)
    def _():
        o_ref[...] = x_ref[...]

    x = o_ref[...]                                    # (N, C) float32
    pol = pol_ref[...]                                # (1, N)
    N, C = x.shape
    D = C // heads

    # ---- attention (policy-masked softmax, DynamicViT semantics) ----
    xn = _ln(x, n1g_ref[...], n1b_ref[...])
    qkv = jnp.dot(xn.astype(jnp.bfloat16), qkvw_ref[...],
                  preferred_element_type=jnp.float32) + qkvb_ref[...]   # (N, 3C)

    row = jax.lax.broadcasted_iota(jnp.int32, (N, N), 0)
    col = jax.lax.broadcasted_iota(jnp.int32, (N, N), 1)
    eye = (row == col).astype(jnp.float32)
    attn_policy = pol + (1.0 - pol) * eye             # (N, N), shared across heads

    projw = projw_ref[...]                            # f32; 8-aligned sublane slices
    acc = projb_ref[...]                              # (1, C) -> broadcasts on first add
    # TODO(synk): at real dims (heads=12, D=64) switch to lax.fori_loop / 128-aligned
    # paired-head slices; at this toy size a static unroll is cheapest.
    for h in range(heads):
        qh = qkv[:, h * D:(h + 1) * D]
        kh = qkv[:, C + h * D:C + (h + 1) * D]
        vh = qkv[:, 2 * C + h * D:2 * C + (h + 1) * D]
        s = jax.lax.dot_general(qh, kh, (((1,), (1,)), ((), ())),
                                preferred_element_type=jnp.float32) * scale  # (N, N)
        m = jnp.max(s, axis=-1, keepdims=True)
        a = jnp.exp(s - m) * attn_policy
        a = (a + ATTN_EPS / N) * pl.reciprocal(
            jnp.sum(a, axis=-1, keepdims=True) + ATTN_EPS, approx=True)
        oh = jnp.dot(a, vh, preferred_element_type=jnp.float32)              # (N, D)
        # attn_out @ projW == sum_h oh @ projW[h*D:(h+1)*D]  (avoids in-kernel concat)
        acc = acc + jnp.dot(oh.astype(jnp.bfloat16),
                            projw[h * D:(h + 1) * D, :].astype(jnp.bfloat16),
                            preferred_element_type=jnp.float32)
    x = x + acc

    # ---- MLP ----
    xn2 = _ln(x, n2g_ref[...], n2b_ref[...])
    # TODO(synk): PyTorch nn.GELU uses exact erf; tanh approximation used for
    # guaranteed Mosaic lowering (EUP tanh).
    h1 = jax.nn.gelu(jnp.dot(xn2.astype(jnp.bfloat16), fc1w_ref[...],
                             preferred_element_type=jnp.float32) + fc1b_ref[...],
                     approximate=True)
    x = x + jnp.dot(h1.astype(jnp.bfloat16), fc2w_ref[...],
                    preferred_element_type=jnp.float32) + fc2b_ref[...]
    o_ref[...] = x


_STAGE_W_NAMES = ['n1g', 'n1b', 'qkvw', 'qkvb', 'projw', 'projb',
                  'n2g', 'n2b', 'fc1w', 'fc1b', 'fc2w', 'fc2b']


def fused_stage(x, pol, stage):
    """x: (B, 2, N, C) tokens, pol: (B, 2, 1, N) policy, stage: stacked (2, L, ...) weights."""
    B, S, N, C = x.shape
    L = stage['qkvw'].shape[1]

    def xmap(b, s, l):
        return (b, s, 0, 0)

    def wmap(b, s, l):
        return (s, l, 0, 0)

    w_args = [stage[k] for k in _STAGE_W_NAMES]
    in_specs = [pl.BlockSpec((None, None, N, C), xmap),
                pl.BlockSpec((None, None, 1, N), xmap)]
    in_specs += [pl.BlockSpec((None, None) + a.shape[2:], wmap) for a in w_args]
    return pl.pallas_call(
        functools.partial(_stage_kernel, heads=HEADS, scale=(C // HEADS) ** -0.5),
        out_shape=jax.ShapeDtypeStruct((B, S, N, C), jnp.float32),
        grid=(B, S, L),
        in_specs=in_specs,
        out_specs=pl.BlockSpec((None, None, N, C), xmap),
        compiler_params=pltpu.CompilerParams(
            dimension_semantics=("parallel", "parallel", "arbitrary"),
            vmem_limit_bytes=VMEM_LIMIT),
    )(x, pol, *w_args)


@jax.jit
def run_stage(audio, image, pol_a3, pol_i3, stage):
    """Pad both streams to a common token count, run the fused stage, slice back.

    Padded tokens carry policy 0, so real-token attention is unaffected (up to the
    reference's own eps/N smoothing term); padded rows are discarded by the slice.
    """
    B, Na, C = audio.shape
    Ni = image.shape[1]
    N = max(Na, Ni)
    a_p = jnp.pad(audio, ((0, 0), (0, N - Na), (0, 0)))
    i_p = jnp.pad(image, ((0, 0), (0, N - Ni), (0, 0)))
    x = jnp.stack([a_p, i_p], axis=1)                         # (B, 2, N, C)
    pa = jnp.pad(pol_a3, ((0, 0), (0, 0), (0, N - Na)))
    pi = jnp.pad(pol_i3, ((0, 0), (0, 0), (0, N - Ni)))
    pol = jnp.stack([pa, pi], axis=1)                         # (B, 2, 1, N)
    y = fused_stage(x, pol, stage)
    return y[:, 0, :Na], y[:, 1, :Ni]


# --------------------------------- fused predictor ----------------------------------
def _predictor_kernel(x_ref, pol_ref, lng_ref, lnb_ref, wi_ref, bi_ref,
                      w1_ref, b1_ref, w2_ref, b2_ref, w3_ref, b3_ref, o_ref):
    x = x_ref[...]                                    # (N, C)
    pol = pol_ref[...]                                # (1, N)
    N, C = x.shape
    half = C // 2
    xn = _ln(x, lng_ref[...], lnb_ref[...])
    x1 = jax.nn.gelu(jnp.dot(xn, wi_ref[...], preferred_element_type=jnp.float32)
                     + bi_ref[...], approximate=True)          # (N, C)
    local = x1[:, :half]
    num = jnp.dot(pol, x1[:, half:], preferred_element_type=jnp.float32)      # (1, half)
    glob = num * pl.reciprocal(jnp.sum(pol, axis=-1, keepdims=True))          # masked mean
    # cat([local, glob.expand]) @ W1 == local @ W1[:half] + glob @ W1[half:]
    h1 = jax.nn.gelu(jnp.dot(local, w1_ref[:half, :], preferred_element_type=jnp.float32)
                     + jnp.dot(glob, w1_ref[half:, :], preferred_element_type=jnp.float32)
                     + b1_ref[...], approximate=True)
    h2 = jax.nn.gelu(jnp.dot(h1, w2_ref[...], preferred_element_type=jnp.float32)
                     + b2_ref[...], approximate=True)
    y = jnp.dot(h2, w3_ref[...], preferred_element_type=jnp.float32) + b3_ref[...]  # (N, 2)
    m = jnp.max(y, axis=-1, keepdims=True)
    z = y - m
    ls0 = z[:, 0:1] - jnp.log(jnp.sum(jnp.exp(z), axis=-1, keepdims=True))    # (N, 1)
    # Lane-dense (1, N) writeback: move the score column onto the lane axis via a
    # diagonal select + sublane reduce (avoids a 2-wide masked-store minor dim).
    row = jax.lax.broadcasted_iota(jnp.int32, (N, N), 0)
    col = jax.lax.broadcasted_iota(jnp.int32, (N, N), 1)
    eye = (row == col).astype(jnp.float32)
    o_ref[...] = jnp.sum(ls0 * eye, axis=0, keepdims=True)                    # (1, N)


def fused_predictor(pred, x, pol3):
    B, N, C = x.shape
    args = (x, pol3,
            pred['in_ln']['g'].reshape(1, C), pred['in_ln']['b'].reshape(1, C),
            pred['in_fc']['w'], pred['in_fc']['b'].reshape(1, C),
            pred['fc1']['w'], pred['fc1']['b'].reshape(1, C // 2),
            pred['fc2']['w'], pred['fc2']['b'].reshape(1, C // 4),
            pred['fc3']['w'], pred['fc3']['b'].reshape(1, 2))
    in_specs = [pl.BlockSpec((None, N, C), lambda b: (b, 0, 0)),
                pl.BlockSpec((None, 1, N), lambda b: (b, 0, 0))]
    in_specs += [_full_spec(a) for a in args[2:]]
    return pl.pallas_call(
        _predictor_kernel,
        out_shape=jax.ShapeDtypeStruct((B, 1, N), jnp.float32),
        grid=(B,),
        in_specs=in_specs,
        out_specs=pl.BlockSpec((None, 1, N), lambda b: (b, 0, 0)),
        compiler_params=pltpu.CompilerParams(
            dimension_semantics=("parallel",),
            vmem_limit_bytes=VMEM_LIMIT),
    )(*args)


@jax.jit
def predictor_score(pred, spatial_x, prev_decision):
    # prev_decision: (B, Nsp) float32; returns class-0 log-softmax scores (B, Nsp)
    return fused_predictor(pred, spatial_x, prev_decision[:, None, :])[:, 0, :]


# -------------------------------- fused output head --------------------------------
def _head_kernel(acls_ref, icls_ref, ag_ref, ab_ref, ig_ref, ib_ref,
                 hg_ref, hb_ref, w_ref, b_ref, o_ref):
    a = _ln(acls_ref[...], ag_ref[...], ab_ref[...])          # (B, C)
    i = _ln(icls_ref[...], ig_ref[...], ib_ref[...])
    C = a.shape[-1]
    two_c = 2.0 * C
    mu = (jnp.sum(a, axis=-1, keepdims=True) + jnp.sum(i, axis=-1, keepdims=True)) / two_c
    var = (jnp.sum(jnp.square(a - mu), axis=-1, keepdims=True)
           + jnp.sum(jnp.square(i - mu), axis=-1, keepdims=True)) / two_c
    rs = jax.lax.rsqrt(var + LN_EPS)
    hg = hg_ref[...]
    hb = hb_ref[...]
    xa = (a - mu) * rs * hg[:, :C] + hb[:, :C]
    xi = (i - mu) * rs * hg[:, C:] + hb[:, C:]
    o_ref[...] = (jnp.dot(xa, w_ref[:C, :], preferred_element_type=jnp.float32)
                  + jnp.dot(xi, w_ref[C:, :], preferred_element_type=jnp.float32)
                  + b_ref[...])


@jax.jit
def output_head_jit(audio, image, a_norm, i_norm, head_ln, head_fc):
    # TODO(synk): reference output() also builds `features`, which the caller discards;
    # only the cls-token path is materialized here.
    a_cls = audio[:, 0]
    i_cls = image[:, 0]
    B, C = a_cls.shape
    args = (a_cls, i_cls,
            a_norm['g'].reshape(1, C), a_norm['b'].reshape(1, C),
            i_norm['g'].reshape(1, C), i_norm['b'].reshape(1, C),
            head_ln['g'].reshape(1, 2 * C), head_ln['b'].reshape(1, 2 * C),
            head_fc['w'], head_fc['b'].reshape(1, PAD_CLASSES))
    logits = pl.pallas_call(
        _head_kernel,
        out_shape=jax.ShapeDtypeStruct((B, PAD_CLASSES), jnp.float32),
        grid=(1,),
        in_specs=[_full_spec(a) for a in args],
        out_specs=pl.BlockSpec((B, PAD_CLASSES), functools.partial(_const_idx, n=2)),
        compiler_params=pltpu.CompilerParams(
            dimension_semantics=("arbitrary",),
            vmem_limit_bytes=VMEM_LIMIT),
    )(*args)
    return logits[:, :NUM_CLASSES]


# ----------------------------------- patch embed ------------------------------------
def _patch_kernel(x_ref, w_ref, b_ref, o_ref):
    o_ref[...] = jnp.dot(x_ref[...].astype(jnp.bfloat16),
                         w_ref[...].astype(jnp.bfloat16),
                         preferred_element_type=jnp.float32) + b_ref[...]


@jax.jit
def preprocess_jit(patch_w, patch_b, cls, pos, x_nchw):
    # Conv2d(stride=kernel=PATCH) implemented as unfold (XLA reshape/transpose) + Pallas matmul.
    B, Cin, H, W = x_nchw.shape
    nH, nW = H // PATCH, W // PATCH
    xp = x_nchw.reshape(B, Cin, nH, PATCH, nW, PATCH)
    xp = xp.transpose(0, 2, 4, 1, 3, 5).reshape(B * nH * nW, Cin * PATCH * PATCH)
    args = (xp, patch_w, patch_b.reshape(1, EMBED))
    tok = pl.pallas_call(
        _patch_kernel,
        out_shape=jax.ShapeDtypeStruct((xp.shape[0], EMBED), jnp.float32),
        grid=(1,),
        in_specs=[_full_spec(a) for a in args],
        out_specs=pl.BlockSpec((xp.shape[0], EMBED), functools.partial(_const_idx, n=2)),
        compiler_params=pltpu.CompilerParams(dimension_semantics=("arbitrary",)),
    )(*args)
    tok = tok.reshape(B, nH * nW, EMBED)
    cls_b = jnp.broadcast_to(cls, (B, 1, EMBED))
    return jnp.concatenate([cls_b, tok], axis=1) + pos


@jax.jit
def gather_tokens(x, idx):
    return jnp.take_along_axis(x, idx[:, :, None], axis=1)


# ------------------------------ runtime pruning control ----------------------------
def shared_inference(model, audio, image, keep_policy, prev_decision, B):
    num_patches = model['num_patches']
    audio_token = image_token = None
    for i, loc in enumerate(PRUNING_LOC):
        token_len_audio = audio.shape[1] - 1
        if i > 0:
            spatial_x = jnp.concatenate([audio[:, 1:], image[:, 1:]], axis=1)
            score = np.asarray(predictor_score(model['predictors'][i],
                                               spatial_x, prev_decision))
            # TODO(synk): token selection stays host-side (one sync per stage) because
            # the reference's pad_sequence yields data-dependent shapes; fully on-device
            # top_k + static padding would alter the reference's selection semantics.
            num_keep_node = int(num_patches * TOKEN_RATIO[i])
            keep_policy = np.argsort(-score, axis=1, kind='stable')[:, :num_keep_node]
        keep_policy = np.asarray(keep_policy)

        keep_audio_m = keep_policy < token_len_audio
        audio_token = keep_audio_m.sum(axis=1)
        max_a = int(audio_token.max())
        policy_a = (np.arange(max_a)[None, :] < audio_token[:, None]).astype(np.float32)

        keep_image_m = keep_policy >= token_len_audio
        image_token = keep_image_m.sum(axis=1)
        max_i = int(image_token.max())
        policy_i = (np.arange(max_i)[None, :] < image_token[:, None]).astype(np.float32)

        cls_mask = np.ones((B, 1), np.float32)
        policy_a = np.concatenate([cls_mask, policy_a], axis=1)   # (B, 1+max_a)
        policy_i = np.concatenate([cls_mask, policy_i], axis=1)   # (B, 1+max_i)

        # pad_sequence equivalent (host-side, dynamic shapes)
        keep_audio = np.zeros((B, max_a), dtype=np.int32)
        keep_image = np.full((B, max_i), token_len_audio, dtype=np.int32)
        for b in range(B):
            ia = keep_policy[b][keep_audio_m[b]]
            keep_audio[b, :len(ia)] = ia
            ii = keep_policy[b][keep_image_m[b]]
            keep_image[b, :len(ii)] = ii
        keep_image = keep_image - token_len_audio

        now_a = np.concatenate([np.zeros((B, 1), np.int32), keep_audio + 1], axis=1)
        now_i = np.concatenate([np.zeros((B, 1), np.int32), keep_image + 1], axis=1)
        audio = gather_tokens(audio, jnp.asarray(now_a, jnp.int32))
        image = gather_tokens(image, jnp.asarray(now_i, jnp.int32))

        prev_decision = jnp.asarray(
            np.concatenate([policy_a[:, 1:], policy_i[:, 1:]], axis=1), jnp.float32)
        pol_a3 = jnp.asarray(policy_a[:, None, :], jnp.float32)   # (B, 1, 1+max_a)
        pol_i3 = jnp.asarray(policy_i[:, None, :], jnp.float32)

        audio, image = run_stage(audio, image, pol_a3, pol_i3, model['stages'][i + 1])

    with np.errstate(divide='ignore', invalid='ignore'):
        max_a_f = float(audio_token.max())
        max_i_f = float(image_token.max())
        r = max_a_f / (max_a_f + max_i_f)
        ratio = [float(np.mean(audio_token / audio_token.max())),
                 float(np.mean(image_token / image_token.max())),
                 r, 1.0 - r, abs(2.0 * r - 1.0)]
    x = output_head_jit(audio, image, model['audio']['norm'], model['image']['norm'],
                        model['head_ln'], model['head_fc'])
    return x, ratio


def cluster_inference(model, audio, image, keep_policy, prev_decision, B):
    keep_policy = np.asarray(keep_policy)
    token_len_audio = audio.shape[1] - 1
    keep_audio = keep_policy < token_len_audio
    audio_token = keep_audio.sum(axis=1)
    sorted_batch = np.argsort(audio_token, kind='stable')
    outputs, ratios = [], []
    for b in range(0, B, REAL_BATCH):
        sel = sorted_batch[b:b + REAL_BATCH]
        out, r = shared_inference(model,
                                  audio[jnp.asarray(sel)],
                                  image[jnp.asarray(sel)],
                                  keep_policy[sel],
                                  prev_decision[b:b + REAL_BATCH],
                                  REAL_BATCH)
        outputs.append(out)
        ratios.append(r)
    out = jnp.concatenate(outputs)[jnp.asarray(np.argsort(sorted_batch, kind='stable'))]
    return out, np.mean(ratios, axis=0)


def avnet_forward(model, audio, image):
    B = audio.shape[0]
    a = preprocess_jit(model['audio']['patch_w'], model['audio']['patch_b'],
                       model['audio']['cls'], model['audio']['pos'], audio[:, None])
    v = preprocess_jit(model['image']['patch_w'], model['image']['patch_b'],
                       model['image']['cls'], model['image']['pos'], image)
    num_patches = model['num_patches']
    prev_decision = jnp.ones((B, num_patches), jnp.float32)
    pol_a3 = jnp.ones((B, 1, a.shape[1]), jnp.float32)
    pol_i3 = jnp.ones((B, 1, v.shape[1]), jnp.float32)
    a, v = run_stage(a, v, pol_a3, pol_i3, model['stages'][0])
    spatial_x = jnp.concatenate([a[:, 1:], v[:, 1:]], axis=1)
    score = np.asarray(predictor_score(model['predictors'][0], spatial_x, prev_decision))
    num_keep_node = int(num_patches * TOKEN_RATIO[0])
    keep_policy = np.argsort(-score, axis=1, kind='stable')[:, :num_keep_node]
    x, ratio = cluster_inference(model, a, v, keep_policy, prev_decision, B)
    return x, ratio


# --------------------------------- parameter init ----------------------------------
def init_linear(key, fan_in, fan_out):
    w = jax.random.normal(key, (fan_in, fan_out), jnp.float32) * 0.02
    return {'w': w, 'b': jnp.zeros((fan_out,), jnp.float32)}


def init_ln(dim):
    return {'g': jnp.ones((dim,), jnp.float32), 'b': jnp.zeros((dim,), jnp.float32)}


def init_block(key, dim):
    k = jax.random.split(key, 4)
    return {'norm1': init_ln(dim),
            'qkv': init_linear(k[0], dim, 3 * dim),
            'proj': init_linear(k[1], dim, dim),
            'norm2': init_ln(dim),
            'fc1': init_linear(k[2], dim, MLP_RATIO * dim),
            'fc2': init_linear(k[3], MLP_RATIO * dim, dim)}


def init_transformer(key, in_chans, hw):
    H, W = hw
    num_patches = (H // PATCH) * (W // PATCH)
    k = jax.random.split(key, DEPTH + 3)
    params = {
        'patch_w': jax.random.normal(k[0], (in_chans * PATCH * PATCH, EMBED), jnp.float32) * 0.02,
        'patch_b': jnp.zeros((EMBED,), jnp.float32),
        'cls': jax.random.normal(k[1], (1, 1, EMBED), jnp.float32) * 0.02,
        'pos': jax.random.normal(k[2], (1, num_patches + 1, EMBED), jnp.float32) * 0.02,
        'blocks': [init_block(k[3 + i], EMBED) for i in range(DEPTH)],
        'norm': init_ln(EMBED),
    }
    return params, num_patches


def init_predictor(key, dim):
    k = jax.random.split(key, 4)
    return {'in_ln': init_ln(dim),
            'in_fc': init_linear(k[0], dim, dim),
            'fc1': init_linear(k[1], dim, dim // 2),
            'fc2': init_linear(k[2], dim // 2, dim // 4),
            'fc3': init_linear(k[3], dim // 4, 2)}


def stack_stage_params(blocks_a, blocks_i, dim):
    """Stack per-layer weights of both streams into (2 streams, L layers, ...) tensors."""
    def stk(name, key, dtype, shape):
        return jnp.stack([
            jnp.stack([blk[name][key].reshape(shape).astype(dtype) for blk in blocks])
            for blocks in (blocks_a, blocks_i)])
    return {
        'n1g':  stk('norm1', 'g', jnp.float32, (1, dim)),
        'n1b':  stk('norm1', 'b', jnp.float32, (1, dim)),
        'qkvw': stk('qkv', 'w', jnp.bfloat16, (dim, 3 * dim)),
        'qkvb': stk('qkv', 'b', jnp.float32, (1, 3 * dim)),
        'projw': stk('proj', 'w', jnp.float32, (dim, dim)),   # f32: 8-aligned head slices
        'projb': stk('proj', 'b', jnp.float32, (1, dim)),
        'n2g':  stk('norm2', 'g', jnp.float32, (1, dim)),
        'n2b':  stk('norm2', 'b', jnp.float32, (1, dim)),
        'fc1w': stk('fc1', 'w', jnp.bfloat16, (dim, MLP_RATIO * dim)),
        'fc1b': stk('fc1', 'b', jnp.float32, (1, MLP_RATIO * dim)),
        'fc2w': stk('fc2', 'w', jnp.bfloat16, (MLP_RATIO * dim, dim)),
        'fc2b': stk('fc2', 'b', jnp.float32, (1, dim)),
    }


def init_model(key):
    ka, ki, kp, kh = jax.random.split(key, 4)
    audio_p, na = init_transformer(ka, in_chans=1, hw=(AUDIO_H, AUDIO_W))
    image_p, ni = init_transformer(ki, in_chans=3, hw=(IMG_H, IMG_W))
    preds = [init_predictor(jax.random.fold_in(kp, i), EMBED)
             for i in range(len(PRUNING_LOC))]
    # Pre-stacked per-stage weights: stage 0 = blocks[0:PRUNING_LOC[0]], then 3-block
    # stages at each pruning location (matches the reference's loc..loc+3 loop).
    stages = [stack_stage_params(audio_p['blocks'][0:PRUNING_LOC[0]],
                                 image_p['blocks'][0:PRUNING_LOC[0]], EMBED)]
    for loc in PRUNING_LOC:
        stages.append(stack_stage_params(audio_p['blocks'][loc:loc + 3],
                                         image_p['blocks'][loc:loc + 3], EMBED))
    # Classifier padded to a lane-aligned 384 output dim (sliced back to 309 outside).
    head_w = jax.random.normal(kh, (2 * EMBED, NUM_CLASSES), jnp.float32) * 0.02
    head_w = jnp.zeros((2 * EMBED, PAD_CLASSES), jnp.float32).at[:, :NUM_CLASSES].set(head_w)
    head_b = jnp.zeros((PAD_CLASSES,), jnp.float32)
    return {'audio': audio_p, 'image': image_p, 'predictors': preds,
            'stages': stages,
            'head_ln': init_ln(2 * EMBED),
            'head_fc': {'w': head_w, 'b': head_b},
            'num_patches': na + ni}


# -------------------------------------- main ---------------------------------------
if __name__ == "__main__":
    key = jax.random.PRNGKey(0)
    k_model, k_a, k_i = jax.random.split(key, 3)
    model = init_model(k_model)
    audio = jax.random.normal(k_a, (BATCH, AUDIO_H, AUDIO_W), jnp.float32)
    image = jax.random.normal(k_i, (BATCH, 3, IMG_H, IMG_W), jnp.float32)
    logits, ratio = avnet_forward(model, audio, image)
    logits = jax.block_until_ready(logits)
    assert logits.shape == (BATCH, NUM_CLASSES)
    assert np.asarray(ratio).shape == (5,)
    print("KERNEL_OK")
</pallas_src>

<mosaic_0001>
module attributes {stable_mosaic.version = 11 : i64} {
  func.func @_patch_kernel(%arg0: i32, %arg1: memref<12x64xf32, #tpu.memory_space<vmem>>, %arg2: memref<64x32xf32, #tpu.memory_space<vmem>>, %arg3: memref<1x32xf32, #tpu.memory_space<vmem>>, %arg4: memref<12x32xf32, #tpu.memory_space<vmem>>) attributes {dimension_semantics = [#tpu.dimension_semantics<arbitrary>], iteration_bounds = array<i64: 1>, scalar_prefetch = 0 : i64, scratch_operands = 0 : i64, tpu.core_type = #tpu.core_type<tc>, window_params = [{pipeline_mode = #tpu.pipeline_mode<synchronous>, transform_indices = @transform_0, window_bounds = array<i64: 12, 64>}, {pipeline_mode = #tpu.pipeline_mode<synchronous>, transform_indices = @transform_1, window_bounds = array<i64: 64, 32>}, {pipeline_mode = #tpu.pipeline_mode<synchronous>, transform_indices = @transform_2, window_bounds = array<i64: 1, 32>}, {pipeline_mode = #tpu.pipeline_mode<synchronous>, transform_indices = @transform_3, window_bounds = array<i64: 12, 32>}]} {
    %c0 = arith.constant 0 : index
    %c0_0 = arith.constant 0 : index
    %0 = vector.load %arg1[%c0, %c0_0] : memref<12x64xf32, #tpu.memory_space<vmem>>, vector<12x64xf32>
    %1 = arith.truncf %0 : vector<12x64xf32> to vector<12x64xbf16>
    %c0_1 = arith.constant 0 : index
    %c0_2 = arith.constant 0 : index
    %2 = vector.load %arg2[%c0_1, %c0_2] : memref<64x32xf32, #tpu.memory_space<vmem>>, vector<64x32xf32>
    %3 = arith.truncf %2 : vector<64x32xf32> to vector<64x32xbf16>
    %cst = arith.constant dense<0.000000e+00> : vector<12x32xf32>
    %4 = tpu.matmul %1, %3, %cst {dimension_numbers = #tpu.dot_dimension_numbers<[1], [0], [0], [1], [0, 0, 1, 1], [], []>} : vector<12x64xbf16>, vector<64x32xbf16>, vector<12x32xf32> -> vector<12x32xf32>
    %c0_3 = arith.constant 0 : index
    %c0_4 = arith.constant 0 : index
    %5 = vector.load %arg3[%c0_3, %c0_4] : memref<1x32xf32, #tpu.memory_space<vmem>>, vector<1x32xf32>
    %6 = vector.broadcast %5 : vector<1x32xf32> to vector<12x32xf32>
    %7 = arith.addf %4, %6 : vector<12x32xf32>
    %c0_5 = arith.constant 0 : index
    %c0_6 = arith.constant 0 : index
    %8 = vector.load %arg4[%c0_5, %c0_6] : memref<12x32xf32, #tpu.memory_space<vmem>>, vector<12x32xf32>
    tpu.vector_store %arg4[%c0_5, %c0_6], %7 {strides = array<i32>} : memref<12x32xf32, #tpu.memory_space<vmem>>, vector<12x32xf32>,
    return
  }
  func.func @transform_0(%arg0: i32) -> (i32, i32) {
    %c0_i32 = arith.constant 0 : i32
    %c0_i32_0 = arith.constant 0 : i32
    %c0_i32_1 = arith.constant 0 : i32
    return %c0_i32, %c0_i32_0 : i32, i32
  }
  func.func @transform_1(%arg0: i32) -> (i32, i32) {
    %c0_i32 = arith.constant 0 : i32
    %c0_i32_0 = arith.constant 0 : i32
    %c0_i32_1 = arith.constant 0 : i32
    return %c0_i32, %c0_i32_0 : i32, i32
  }
  func.func @transform_2(%arg0: i32) -> (i32, i32) {
    %c0_i32 = arith.constant 0 : i32
    %c0_i32_0 = arith.constant 0 : i32
    %c0_i32_1 = arith.constant 0 : i32
    return %c0_i32, %c0_i32_0 : i32, i32
  }
  func.func @transform_3(%arg0: i32) -> (i32, i32) {
    %c0_i32 = arith.constant 0 : i32
    %c0_i32_0 = arith.constant 0 : i32
    %c0_i32_1 = arith.constant 0 : i32
    return %c0_i32, %c0_i32_0 : i32, i32
  }
}

</mosaic_0001>

<bundles_post_ra>
// kernel: preprocess_jit.1
= control target key start
LH: loop header
LB: loop body
LE: loop exit
PB: predicated region body
PF: predicated region fallthrough
CT: control target
= control target key end

     0   :  { %v111_v0 = vmov 0.0   ;;  %vm112_vm0 = vmmov 0   ;;  %vm37_vm1 = vcmask 523264   ;;  %vm82_vm2 = vcmask 261120   ;;  %s172_s1 = inlined_call_operand.vmem [shape: f32[64,32], index: 1, kind: input, shape index: {}]   ;;  %s173_s0 = inlined_call_operand.vmem [shape: f32[12,64], index: 0, kind: input, shape index: {}]   ;;  %s174_s2 = inlined_call_operand.vmem [shape: f32[1,32], index: 2, kind: input, shape index: {}]   ;;  %s175_s3 = inlined_call_operand.vmem [shape: f32[12,32], index: 3, kind: output, shape index: {}]  }
   0x1   :  { %97 = vmatprep.subr.bf16.mxu0 %v111_v0  ;;  %v18_v1 = vld [vmem:[%s172_s1] sm:$0xff]  ;;  %v19_v2 = vld [vmem:[%s172_s1 + $0x8] sm:$0xff]  ;;  %v20_v3 = vld [vmem:[%s172_s1 + $0x10] sm:$0xff]  ;;  %105 = vmatprep.mubr.msk.bf16.mxu0 %vm112_vm0, %v111_v0  ;;  %vm84_vm3 = vcmask 257024  }
   0x2   :  { %v26_v4 = vpack.c.bf16 %v19_v2, %v18_v1  ;;  %v21_v5 = vld [vmem:[%s172_s1 + $0x18] sm:$0xff]  ;;  %v22_v7 = vld [vmem:[%s172_s1 + $0x20] sm:$0xff]  ;;  %v23_v8 = vld [vmem:[%s172_s1 + $0x28] sm:$0xff] }
   0x3   :  { %v27_v6 = vpack.c.bf16 %v21_v5, %v20_v3  ;;  %v28_v9 = vpack.c.bf16 %v23_v8, %v22_v7  ;;  %v24_v10 = vld [vmem:[%s172_s1 + $0x30] sm:$0xff]  ;;  %v25_v11 = vld [vmem:[%s172_s1 + $0x38] sm:$0xff]  ;;  %v15_v13 = vld [vmem:[%s173_s0] sm:$0xff] }
   0x4   :  { %98 = vmatpush3.bf16.msra.mxu0 %v26_v4  ;;  %v29_v12 = vpack.c.bf16 %v25_v11, %v24_v10  ;;  %v16_v14 = vld [vmem:[%s173_s0 + $0x8] sm:$0xf]  ;;  %v90_v16 = vld [vmem:[%s174_s2] ss:$0 sm:$0xff] }
   0x5   :  { %99 = vmatprep.subr.bf16.mxu0 %v111_v0  ;;  %v17_v15 = vpack.c.bf16 %v16_v14, %v15_v13 }
   0x8   :  { %100 = vmatpush3.bf16.msra.mxu0 %v27_v6 }
   0x9   :  { %101 = vmatprep.subr.bf16.mxu0 %v111_v0 }
   0xc   :  { %102 = vmatpush3.bf16.msra.mxu0 %v28_v9 }
   0xd   :  { %103 = vmatprep.subr.bf16.mxu0 %v111_v0 }
  0x10   :  { %104 = vmatpush3.bf16.msra.mxu0 %v29_v12 }
  0x13   :  { %106 = vmatmul.mubr.msk.bf16.vlgmr.msra.gmra.mrb[0].mxu0 %vm37_vm1, %v17_v15 }
  0xe6   :  { %v75_v17 = vpop.f32.mrb[0].mxu0 }
  0xe7   :  { %v76_v18 = vadd.f32 %v90_v16, %v75_v17  ;;  %v107_v19 = vpop.f32.mrb[1].mxu0 }
  0xe8   :  { %v78_v20 = vpop.f32.mrb[2].mxu0 }
  0xe9   :  { %83 = vst.msk [vmem:[%s175_s3] sm:$0xff] %vm82_vm2, %v76_v18  ;;  %v79_v21 = vadd.f32 %v90_v16, %v78_v20  ;;  %v108_v22 = vpop.f32.mrb[3].mxu0 }
  0xeb   :  { %85 = vst.msk [vmem:[%s175_s3 + $0x8] sm:$0xf] %vm84_vm3, %v79_v21 }

</bundles_post_ra>
